<compile_context>
chip_gen: v5e
topology: v5e:2x2
jax: 0.10.0
libtpu: 0.0.40
codegen_flags: <defaults>
</compile_context>

<pallas_src>
import functools

import jax
import jax.numpy as jnp
from jax import lax
from jax.experimental import pallas as pl
from jax.experimental.pallas import tpu as pltpu


def _round_up(x, m):
    return ((x + m - 1) // m) * m


def _vmem_capacity_bytes():
    try:
        info = pltpu.get_tpu_info()
        return int(getattr(info, "vmem_capacity_bytes", 64 << 20))
    except Exception:
        return 64 << 20   # safe lower bound (v7x per-core VMEM)


# ----------------------------------------------------------------------------
# Fused single-launch kernel for small problems (whole working set in VMEM).
# ----------------------------------------------------------------------------
def _fused_small_kernel(x_ref, phi_ref, w_in_t_ref, b_in_ref, filt_ref,
                        w_out_t_ref, b_out_ref, o_ref, *, compute_dtype):
    x1 = jnp.dot(x_ref[...], w_in_t_ref[...],
                 preferred_element_type=jnp.float32) + b_in_ref[...]
    # Phi^T @ X1 without materializing a transpose (contract dim 0 of both).
    y = lax.dot_general(phi_ref[...], x1.astype(compute_dtype),
                        dimension_numbers=(((0,), (0,)), ((), ())),
                        preferred_element_type=jnp.float32)
    y2 = jnp.dot((filt_ref[...] * y).astype(compute_dtype),
                 w_out_t_ref[...],
                 preferred_element_type=jnp.float32)
    o_ref[...] = jnp.dot(phi_ref[...], y2.astype(compute_dtype),
                         preferred_element_type=jnp.float32) + b_out_ref[...]


# ----------------------------------------------------------------------------
# Phase 1: reduce over node tiles ->
#   Y2_part[c] = (filters * sum_j Phi_tile^T @ (X_tile W_in^T + b_in)) @ W_out^T
# grid = (n_split "parallel", inner "arbitrary")  -- n_split=2 uses both v7x TCs.
# ----------------------------------------------------------------------------
def _spectral_reduce_kernel(x_ref, phi_ref, w_in_t_ref, b_in_ref, filt_ref,
                            w_out_t_ref, y2_ref, acc_ref, *, compute_dtype):
    j = pl.program_id(1)                      # node-tile reduction index

    @pl.when(j == 0)
    def _():
        acc_ref[...] = jnp.zeros_like(acc_ref)

    x1 = jnp.dot(x_ref[...], w_in_t_ref[...],
                 preferred_element_type=jnp.float32) + b_in_ref[...]
    acc_ref[...] += lax.dot_general(
        phi_ref[...], x1.astype(compute_dtype),
        dimension_numbers=(((0,), (0,)), ((), ())),
        preferred_element_type=jnp.float32)

    @pl.when(j == pl.num_programs(1) - 1)
    def _():
        y2_ref[...] = jnp.dot(
            (filt_ref[...] * acc_ref[...]).astype(compute_dtype),
            w_out_t_ref[...],
            preferred_element_type=jnp.float32)


# ----------------------------------------------------------------------------
# Phase 2: per node tile, Out = Phi_tile @ sum_c Y2_part[c] + b_out.
# Output is stored un-padded as [tile_n, C]; DMA-bound, contiguous write.
# ----------------------------------------------------------------------------
def _expand_kernel(phi_ref, y2_ref, b_out_ref, o_ref, *, compute_dtype):
    y2 = jnp.sum(y2_ref[...], axis=0)         # [K, C], sum of per-core partials
    o_ref[...] = jnp.dot(phi_ref[...], y2.astype(compute_dtype),
                         preferred_element_type=jnp.float32) + b_out_ref[...]


def my_gcn_conv(x, w_in, b_in, phi, filters, w_out, b_out,
                *, compute_dtype=jnp.float32, tile_n=None):
    """Pallas implementation of myGCNConv.forward.

    x:       [N, num_input]             float32
    w_in:    [num_output, num_input]    (torch nn.Linear layout)
    b_in:    [num_output]
    phi:     [N, K]
    filters: [K]
    w_out:   [num_classes, num_output]
    b_out:   [num_classes]
    returns: [N, num_classes] float32
    """
    compute_dtype = jnp.dtype(compute_dtype)
    in_bytes = compute_dtype.itemsize

    x = jnp.asarray(x, jnp.float32)
    phi = jnp.asarray(phi, jnp.float32)
    N, Fin = x.shape
    K = phi.shape[1]
    Fout = w_in.shape[0]
    C = w_out.shape[0]

    # MXU operands live in HBM at compute_dtype (halves the dominant HBM
    # streams on the bf16 path; identical rounding to an in-kernel cast).
    # Biases / filters stay f32: they are applied to f32 accumulators.
    x_c = x.astype(compute_dtype)
    phi_c = phi.astype(compute_dtype)
    w_in_t = jnp.asarray(w_in, jnp.float32).T.astype(compute_dtype)    # [Fin, Fout]
    w_out_t = jnp.asarray(w_out, jnp.float32).T.astype(compute_dtype)  # [Fout, C]
    b_in2 = jnp.asarray(b_in, jnp.float32).reshape(1, Fout)
    b_out2 = jnp.asarray(b_out, jnp.float32).reshape(1, C)
    filt2 = jnp.asarray(filters, jnp.float32).reshape(K, 1)

    # ---- generation-aware tile sizing (v7x: 64 MiB VMEM; v5e/v6e: 128 MiB) --
    vmem_cap = _vmem_capacity_bytes()
    vmem_limit = int(vmem_cap * 0.75)          # raised scoped-VMEM limit
    stream_budget = vmem_cap // 2              # for double-buffered streams
    per_row = max(2 * (Fin + K) * in_bytes,               # phase-1 inputs
                  2 * (K * in_bytes + C * 4))              # phase-2 in + out
    if tile_n is None:
        tile_n = max(8, min(2048, (stream_budget // per_row) // 8 * 8))
    else:
        tile_n = max(8, _round_up(int(tile_n), 8))

    cparams = dict(vmem_limit_bytes=vmem_limit)

    # ------------------------- small problem: fully fused --------------------
    if N <= tile_n:
        N_pad = _round_up(max(N, 8), 8)
        if N_pad != N:
            # Zero Phi rows cancel the bias rows of padded X in Phi^T @ X1.
            x_c = jnp.zeros((N_pad, Fin), compute_dtype).at[:N].set(x_c)
            phi_c = jnp.zeros((N_pad, K), compute_dtype).at[:N].set(phi_c)
        flops = (2 * N_pad * Fin * Fout + 2 * N_pad * Fout * K
                 + 2 * K * Fout * C + 2 * N_pad * K * C)
        bytes_acc = (in_bytes * (N_pad * (Fin + K) + Fin * Fout + Fout * C)
                     + 4 * (Fout + K + C + N_pad * C))
        out_pad = pl.pallas_call(
            functools.partial(_fused_small_kernel, compute_dtype=compute_dtype),
            out_shape=jax.ShapeDtypeStruct((N_pad, C), jnp.float32),
            grid=(1,),
            in_specs=[
                pl.BlockSpec((N_pad, Fin), lambda i: (0, 0)),
                pl.BlockSpec((N_pad, K), lambda i: (0, 0)),
                pl.BlockSpec((Fin, Fout), lambda i: (0, 0)),
                pl.BlockSpec((1, Fout), lambda i: (0, 0)),
                pl.BlockSpec((K, 1), lambda i: (0, 0)),
                pl.BlockSpec((Fout, C), lambda i: (0, 0)),
                pl.BlockSpec((1, C), lambda i: (0, 0)),
            ],
            out_specs=pl.BlockSpec((N_pad, C), lambda i: (0, 0)),
            compiler_params=pltpu.CompilerParams(
                dimension_semantics=("arbitrary",), **cparams),
            cost_estimate=pl.CostEstimate(flops=flops, transcendentals=0,
                                          bytes_accessed=bytes_acc),
        )(x_c, phi_c, w_in_t, b_in2, filt2, w_out_t, b_out2)
        return out_pad[:N]

    # ------------------------- large problem: two-phase tiled ----------------
    N_pad = _round_up(N, tile_n)
    num_tiles = N_pad // tile_n
    # Split the phase-1 reduction across two TensorCores when tiles split evenly.
    n_split = 2 if (num_tiles >= 2 and num_tiles % 2 == 0) else 1
    inner = num_tiles // n_split
    if N_pad != N:
        x_c = jnp.zeros((N_pad, Fin), compute_dtype).at[:N].set(x_c)
        phi_c = jnp.zeros((N_pad, K), compute_dtype).at[:N].set(phi_c)

    # Phase 1: Y2_parts[c] = (filt * Phi_c^T X1_c) @ W_out^T   -> [n_split, K, C]
    flops1 = (2 * N_pad * Fin * Fout + 2 * N_pad * Fout * K
              + 2 * n_split * K * Fout * C)
    bytes1 = (in_bytes * (N_pad * (Fin + K) + Fin * Fout + Fout * C)
              + 4 * (Fout + K + n_split * K * C))
    y2_parts = pl.pallas_call(
        functools.partial(_spectral_reduce_kernel, compute_dtype=compute_dtype),
        out_shape=jax.ShapeDtypeStruct((n_split, K, C), jnp.float32),
        grid=(n_split, inner),
        in_specs=[
            pl.BlockSpec((tile_n, Fin), lambda c, j: (c * inner + j, 0)),  # X
            pl.BlockSpec((tile_n, K), lambda c, j: (c * inner + j, 0)),    # Phi
            pl.BlockSpec((Fin, Fout), lambda c, j: (0, 0)),                # W_in^T
            pl.BlockSpec((1, Fout), lambda c, j: (0, 0)),                  # b_in
            pl.BlockSpec((K, 1), lambda c, j: (0, 0)),                     # filters
            pl.BlockSpec((Fout, C), lambda c, j: (0, 0)),                  # W_out^T
        ],
        out_specs=pl.BlockSpec((None, K, C), lambda c, j: (c, 0, 0)),
        scratch_shapes=[pltpu.VMEM((K, Fout), jnp.float32)],   # Y accumulator
        compiler_params=pltpu.CompilerParams(
            dimension_semantics=("parallel", "arbitrary"), **cparams),
        cost_estimate=pl.CostEstimate(flops=flops1, transcendentals=0,
                                      bytes_accessed=bytes1),
    )(x_c, phi_c, w_in_t, b_in2, filt2, w_out_t)

    # Phase 2: Out = Phi @ sum_c Y2_parts[c] + b_out   (parallel over node tiles)
    flops2 = 2 * N_pad * K * C + num_tiles * n_split * K * C
    bytes2 = (in_bytes * N_pad * K
              + 4 * (n_split * K * C + C + N_pad * C))
    out_pad = pl.pallas_call(
        functools.partial(_expand_kernel, compute_dtype=compute_dtype),
        out_shape=jax.ShapeDtypeStruct((N_pad, C), jnp.float32),
        grid=(num_tiles,),
        in_specs=[
            pl.BlockSpec((tile_n, K), lambda i: (i, 0)),          # Phi tile
            pl.BlockSpec((n_split, K, C), lambda i: (0, 0, 0)),   # Y2 partials
            pl.BlockSpec((1, C), lambda i: (0, 0)),               # b_out
        ],
        out_specs=pl.BlockSpec((tile_n, C), lambda i: (i, 0)),
        compiler_params=pltpu.CompilerParams(
            dimension_semantics=("parallel",), **cparams),
        cost_estimate=pl.CostEstimate(flops=flops2, transcendentals=0,
                                      bytes_accessed=bytes2),
    )(phi_c, y2_parts, b_out2)

    return out_pad[:N]


def _reference(x, w_in, b_in, phi, filters, w_out, b_out):
    x1 = x @ w_in.T + b_in
    y = filters.reshape(-1, 1) * (phi.T @ x1)
    z = phi @ y
    return z @ w_out.T + b_out


if __name__ == "__main__":
    # ---- test 1: small module-consistent shapes (fused single-kernel path) --
    N, K = 128, 128
    num_input, num_output, num_classes = 32, 32, 8

    key = jax.random.PRNGKey(0)
    kx, kphi, klam, kwi, kbi, kwo, kbo, kx2, kphi2 = jax.random.split(key, 9)

    x = jax.random.normal(kx, (N, num_input), jnp.float32)
    # Phi: orthonormal columns (eigenvector-like), deterministic via QR.
    phi, _ = jnp.linalg.qr(jax.random.normal(kphi, (N, K), jnp.float32))
    lamb_values = jax.random.uniform(klam, (K,), jnp.float32)
    w_in = jax.random.normal(kwi, (num_output, num_input), jnp.float32) * 0.1
    b_in = jax.random.normal(kbi, (num_output,), jnp.float32) * 0.1
    w_out = jax.random.normal(kwo, (num_classes, num_output), jnp.float32) * 0.1
    b_out = jax.random.normal(kbo, (num_classes,), jnp.float32) * 0.1

    ref = _reference(x, w_in, b_in, phi, lamb_values, w_out, b_out)

    out = jax.block_until_ready(
        my_gcn_conv(x, w_in, b_in, phi, lamb_values, w_out, b_out))
    assert out.shape == (N, num_classes)
    assert jnp.allclose(out, ref, atol=1e-3, rtol=1e-3), "fp32 fused mismatch"

    out_bf16 = jax.block_until_ready(
        my_gcn_conv(x, w_in, b_in, phi, lamb_values, w_out, b_out,
                    compute_dtype=jnp.bfloat16))
    assert jnp.allclose(out_bf16, ref, atol=5e-2, rtol=5e-2), "bf16 fused mismatch"

    # ---- test 2: larger N, forced small tile -> tiled two-phase path with the
    #      (parallel, arbitrary) phase-1 two-TensorCore split. ----------------
    N2 = 1024
    x2 = jax.random.normal(kx2, (N2, num_input), jnp.float32)
    phi2 = jax.random.normal(kphi2, (N2, K), jnp.float32) * 0.05
    ref2 = _reference(x2, w_in, b_in, phi2, lamb_values, w_out, b_out)

    out2 = jax.block_until_ready(
        my_gcn_conv(x2, w_in, b_in, phi2, lamb_values, w_out, b_out, tile_n=256))
    assert out2.shape == (N2, num_classes)
    assert jnp.allclose(out2, ref2, atol=5e-3, rtol=5e-3), "fp32 tiled mismatch"

    out2_bf16 = jax.block_until_ready(
        my_gcn_conv(x2, w_in, b_in, phi2, lamb_values, w_out, b_out,
                    tile_n=256, compute_dtype=jnp.bfloat16))
    assert jnp.allclose(out2_bf16, ref2, atol=5e-2, rtol=5e-2), "bf16 tiled mismatch"

    print("KERNEL_OK")
</pallas_src>

<mosaic_0001>
module attributes {stable_mosaic.version = 11 : i64} {
  func.func @_fused_small_kernel(%arg0: i32, %arg1: memref<128x32xf32, #tpu.memory_space<vmem>>, %arg2: memref<128x128xf32, #tpu.memory_space<vmem>>, %arg3: memref<32x32xf32, #tpu.memory_space<vmem>>, %arg4: memref<1x32xf32, #tpu.memory_space<vmem>>, %arg5: memref<128x1xf32, #tpu.memory_space<vmem>>, %arg6: memref<32x8xf32, #tpu.memory_space<vmem>>, %arg7: memref<1x8xf32, #tpu.memory_space<vmem>>, %arg8: memref<128x8xf32, #tpu.memory_space<vmem>>) attributes {dimension_semantics = [#tpu.dimension_semantics<arbitrary>], iteration_bounds = array<i64: 1>, scalar_prefetch = 0 : i64, scratch_operands = 0 : i64, tpu.core_type = #tpu.core_type<tc>, window_params = [{pipeline_mode = #tpu.pipeline_mode<synchronous>, transform_indices = @transform_0, window_bounds = array<i64: 128, 32>}, {pipeline_mode = #tpu.pipeline_mode<synchronous>, transform_indices = @transform_1, window_bounds = array<i64: 128, 128>}, {pipeline_mode = #tpu.pipeline_mode<synchronous>, transform_indices = @transform_2, window_bounds = array<i64: 32, 32>}, {pipeline_mode = #tpu.pipeline_mode<synchronous>, transform_indices = @transform_3, window_bounds = array<i64: 1, 32>}, {pipeline_mode = #tpu.pipeline_mode<synchronous>, transform_indices = @transform_4, window_bounds = array<i64: 128, 1>}, {pipeline_mode = #tpu.pipeline_mode<synchronous>, transform_indices = @transform_5, window_bounds = array<i64: 32, 8>}, {pipeline_mode = #tpu.pipeline_mode<synchronous>, transform_indices = @transform_6, window_bounds = array<i64: 1, 8>}, {pipeline_mode = #tpu.pipeline_mode<synchronous>, transform_indices = @transform_7, window_bounds = array<i64: 128, 8>}]} {
    %c0 = arith.constant 0 : index
    %c0_0 = arith.constant 0 : index
    %0 = vector.load %arg1[%c0, %c0_0] : memref<128x32xf32, #tpu.memory_space<vmem>>, vector<128x32xf32>
    %c0_1 = arith.constant 0 : index
    %c0_2 = arith.constant 0 : index
    %1 = vector.load %arg3[%c0_1, %c0_2] : memref<32x32xf32, #tpu.memory_space<vmem>>, vector<32x32xf32>
    %cst = arith.constant dense<0.000000e+00> : vector<128x32xf32>
    %2 = tpu.matmul %0, %1, %cst {dimension_numbers = #tpu.dot_dimension_numbers<[1], [0], [0], [1], [0, 0, 1, 1], [], []>} : vector<128x32xf32>, vector<32x32xf32>, vector<128x32xf32> -> vector<128x32xf32>
    %c0_3 = arith.constant 0 : index
    %c0_4 = arith.constant 0 : index
    %3 = vector.load %arg4[%c0_3, %c0_4] : memref<1x32xf32, #tpu.memory_space<vmem>>, vector<1x32xf32>
    %4 = vector.broadcast %3 : vector<1x32xf32> to vector<128x32xf32>
    %5 = arith.addf %2, %4 : vector<128x32xf32>
    %c0_5 = arith.constant 0 : index
    %c0_6 = arith.constant 0 : index
    %6 = vector.load %arg2[%c0_5, %c0_6] : memref<128x128xf32, #tpu.memory_space<vmem>>, vector<128x128xf32>
    %cst_7 = arith.constant dense<0.000000e+00> : vector<128x32xf32>
    %7 = tpu.matmul %6, %5, %cst_7 {dimension_numbers = #tpu.dot_dimension_numbers<[0], [0], [1], [1], [0, 1, 1, 1], [], []>} : vector<128x128xf32>, vector<128x32xf32>, vector<128x32xf32> -> vector<128x32xf32>
    %c0_8 = arith.constant 0 : index
    %c0_9 = arith.constant 0 : index
    %8 = vector.load %arg5[%c0_8, %c0_9] : memref<128x1xf32, #tpu.memory_space<vmem>>, vector<128x1xf32>
    %9 = vector.broadcast %8 : vector<128x1xf32> to vector<128x32xf32>
    %10 = arith.mulf %9, %7 : vector<128x32xf32>
    %c0_10 = arith.constant 0 : index
    %c0_11 = arith.constant 0 : index
    %11 = vector.load %arg6[%c0_10, %c0_11] : memref<32x8xf32, #tpu.memory_space<vmem>>, vector<32x8xf32>
    %cst_12 = arith.constant dense<0.000000e+00> : vector<128x8xf32>
    %12 = tpu.matmul %10, %11, %cst_12 {dimension_numbers = #tpu.dot_dimension_numbers<[1], [0], [0], [1], [0, 0, 1, 1], [], []>} : vector<128x32xf32>, vector<32x8xf32>, vector<128x8xf32> -> vector<128x8xf32>
    %c0_13 = arith.constant 0 : index
    %c0_14 = arith.constant 0 : index
    %13 = vector.load %arg2[%c0_13, %c0_14] : memref<128x128xf32, #tpu.memory_space<vmem>>, vector<128x128xf32>
    %cst_15 = arith.constant dense<0.000000e+00> : vector<128x8xf32>
    %14 = tpu.matmul %13, %12, %cst_15 {dimension_numbers = #tpu.dot_dimension_numbers<[1], [0], [0], [1], [0, 0, 1, 1], [], []>} : vector<128x128xf32>, vector<128x8xf32>, vector<128x8xf32> -> vector<128x8xf32>
    %c0_16 = arith.constant 0 : index
    %c0_17 = arith.constant 0 : index
    %15 = vector.load %arg7[%c0_16, %c0_17] : memref<1x8xf32, #tpu.memory_space<vmem>>, vector<1x8xf32>
    %16 = vector.broadcast %15 : vector<1x8xf32> to vector<128x8xf32>
    %17 = arith.addf %14, %16 : vector<128x8xf32>
    %c0_18 = arith.constant 0 : index
    %c0_19 = arith.constant 0 : index
    %18 = vector.load %arg8[%c0_18, %c0_19] : memref<128x8xf32, #tpu.memory_space<vmem>>, vector<128x8xf32>
    tpu.vector_store %arg8[%c0_18, %c0_19], %17 {strides = array<i32>} : memref<128x8xf32, #tpu.memory_space<vmem>>, vector<128x8xf32>,
    return
  }
  func.func @transform_0(%arg0: i32) -> (i32, i32) {
    %c0_i32 = arith.constant 0 : i32
    %c0_i32_0 = arith.constant 0 : i32
    %c0_i32_1 = arith.constant 0 : i32
    return %c0_i32, %c0_i32_0 : i32, i32
  }
  func.func @transform_1(%arg0: i32) -> (i32, i32) {
    %c0_i32 = arith.constant 0 : i32
    %c0_i32_0 = arith.constant 0 : i32
    %c0_i32_1 = arith.constant 0 : i32
    return %c0_i32, %c0_i32_0 : i32, i32
  }
  func.func @transform_2(%arg0: i32) -> (i32, i32) {
    %c0_i32 = arith.constant 0 : i32
    %c0_i32_0 = arith.constant 0 : i32
    %c0_i32_1 = arith.constant 0 : i32
    return %c0_i32, %c0_i32_0 : i32, i32
  }
  func.func @transform_3(%arg0: i32) -> (i32, i32) {
    %c0_i32 = arith.constant 0 : i32
    %c0_i32_0 = arith.constant 0 : i32
    %c0_i32_1 = arith.constant 0 : i32
    return %c0_i32, %c0_i32_0 : i32, i32
  }
  func.func @transform_4(%arg0: i32) -> (i32, i32) {
    %c0_i32 = arith.constant 0 : i32
    %c0_i32_0 = arith.constant 0 : i32
    %c0_i32_1 = arith.constant 0 : i32
    return %c0_i32, %c0_i32_0 : i32, i32
  }
  func.func @transform_5(%arg0: i32) -> (i32, i32) {
    %c0_i32 = arith.constant 0 : i32
    %c0_i32_0 = arith.constant 0 : i32
    %c0_i32_1 = arith.constant 0 : i32
    return %c0_i32, %c0_i32_0 : i32, i32
  }
  func.func @transform_6(%arg0: i32) -> (i32, i32) {
    %c0_i32 = arith.constant 0 : i32
    %c0_i32_0 = arith.constant 0 : i32
    %c0_i32_1 = arith.constant 0 : i32
    return %c0_i32, %c0_i32_0 : i32, i32
  }
  func.func @transform_7(%arg0: i32) -> (i32, i32) {
    %c0_i32 = arith.constant 0 : i32
    %c0_i32_0 = arith.constant 0 : i32
    %c0_i32_1 = arith.constant 0 : i32
    return %c0_i32, %c0_i32_0 : i32, i32
  }
}

</mosaic_0001>

<bundles_post_ra>
// kernel: tpu_custom_call.1
= control target key start
LH: loop header
LB: loop body
LE: loop exit
PB: predicated region body
PF: predicated region fallthrough
CT: control target
= control target key end

     0   :  { %vm50_vm0 = vcmask 261120   ;;  %v666_v46 = vmov 0   ;;  %vm575_vm1 = vcmask 64512   ;;  %s1071_s2 = inlined_call_operand.vmem [shape: f32[32,32], index: 2, kind: input, shape index: {}]   ;;  %s1072_s0 = inlined_call_operand.vmem [shape: f32[128,32], index: 0, kind: input, shape index: {}]   ;;  %s1073_s3 = inlined_call_operand.vmem [shape: f32[1,32], index: 3, kind: input, shape index: {}]   ;;  %s1074_s1 = inlined_call_operand.vmem [shape: f32[128,128], index: 1, kind: input, shape index: {}]   ;;  %s1075_s4 = inlined_call_operand.vmem [shape: f32[128,1], index: 4, kind: input, shape index: {}]   ;;  %s1076_s5 = inlined_call_operand.vmem [shape: f32[32,8], index: 5, kind: input, shape index: {}]   ;;  %s1077_s6 = inlined_call_operand.vmem [shape: f32[1,8], index: 6, kind: input, shape index: {}]   ;;  %s1078_s7 = inlined_call_operand.vmem [shape: f32[128,8], index: 7, kind: output, shape index: {}]  }
   0x1   :  { %v45_v0 = vld [vmem:[%s1071_s2 + $0x18] sm:$0xff]  ;;  %v44_v1 = vld [vmem:[%s1071_s2 + $0x10] sm:$0xff]  ;;  %v43_v2 = vld [vmem:[%s1071_s2 + $0x8] sm:$0xff]  ;;  %661 = vset.pattern.permute.xlu1 %v666_v46  ;;  %662 = vset.pattern.permute.xlu2 %v666_v46 }
   0x2   :  { %111 = vmatpush.msra.mxu0 %v45_v0  ;;  %v42_v3 = vld [vmem:[%s1071_s2] sm:$0xff]  ;;  %v27_v5 = vld [vmem:[%s1072_s0 + $0x8] sm:$0xff]  ;;  %v28_v6 = vld [vmem:[%s1072_s0 + $0x10] sm:$0xff] }
   0x3   :  { %v26_v4 = vld [vmem:[%s1072_s0] sm:$0xff]  ;;  %v29_v7 = vld [vmem:[%s1072_s0 + $0x18] sm:$0xff]  ;;  %v31_v9 = vld [vmem:[%s1072_s0 + $0x28] sm:$0xff] }
   0x4   :  { %112 = vmatpush.msra.mxu0 %v44_v1  ;;  %v30_v8 = vld [vmem:[%s1072_s0 + $0x20] sm:$0xff]  ;;  %v32_v10 = vld [vmem:[%s1072_s0 + $0x30] sm:$0xff]  ;;  %v33_v11 = vld [vmem:[%s1072_s0 + $0x38] sm:$0xff] }
   0x5   :  { %v34_v12 = vld [vmem:[%s1072_s0 + $0x40] sm:$0xff]  ;;  %v35_v13 = vld [vmem:[%s1072_s0 + $0x48] sm:$0xff]  ;;  %v36_v15 = vld [vmem:[%s1072_s0 + $0x50] sm:$0xff] }
   0x6   :  { %113 = vmatpush.msra.mxu0 %v43_v2  ;;  %v762_v14 = vld [vmem:[%s1074_s1] sm:$0xff]  ;;  %v772_v16 = vld [vmem:[%s1074_s1 + $0x8] sm:$0xff]  ;;  %v37_v17 = vld [vmem:[%s1072_s0 + $0x58] sm:$0xff] }
   0x7   :  { %180 = vxpose.xlu0.b32.start [1/16] %v762_v14, 128  ;;  %v782_v18 = vld [vmem:[%s1074_s1 + $0x10] sm:$0xff]  ;;  %v38_v19 = vld [vmem:[%s1072_s0 + $0x60] sm:$0xff]  ;;  %v791_v20 = vld [vmem:[%s1074_s1 + $0x18] sm:$0xff] }
   0x8   :  { %114 = vmatpush.msra.mxu0 %v42_v3  ;;  %v39_v21 = vld [vmem:[%s1072_s0 + $0x68] sm:$0xff]  ;;  %v801_v22 = vld [vmem:[%s1074_s1 + $0x20] sm:$0xff]  ;;  %v40_v23 = vld [vmem:[%s1072_s0 + $0x70] sm:$0xff] }
   0x9   :  { %596 = vmatmul.msk.f32.vlgmr.msra.gmra.mxu0 %vm50_vm0, %v26_v4  ;;  %v811_v24 = vld [vmem:[%s1074_s1 + $0x28] sm:$0xff]  ;;  %v41_v25 = vld [vmem:[%s1072_s0 + $0x78] sm:$0xff]  ;;  %v821_v26 = vld [vmem:[%s1074_s1 + $0x30] sm:$0xff] }
   0xa   :  { %v830_v28 = vld [vmem:[%s1074_s1 + $0x38] sm:$0xff]  ;;  %v838_v30 = vld [vmem:[%s1074_s1 + $0x40] sm:$0xff]  ;;  %v846_v32 = vld [vmem:[%s1074_s1 + $0x48] sm:$0xff] }
   0xb   :  { %v854_v34 = vld [vmem:[%s1074_s1 + $0x50] sm:$0xff]  ;;  %v862_v36 = vld [vmem:[%s1074_s1 + $0x58] sm:$0xff]  ;;  %v870_v38 = vld [vmem:[%s1074_s1 + $0x60] sm:$0xff] }
   0xc   :  { %v878_v40 = vld [vmem:[%s1074_s1 + $0x68] sm:$0xff]  ;;  %v886_v42 = vld [vmem:[%s1074_s1 + $0x70] sm:$0xff]  ;;  %v892_v44 = vld [vmem:[%s1074_s1 + $0x78] sm:$0xff] }
   0xd   :  { %v277_v47 = vld [vmem:[%s1075_s4] sm:$0xff]  ;;  %v278_v49 = vld [vmem:[%s1075_s4 + $0x8] sm:$0xff]  ;;  %v283_v53 = vld [vmem:[%s1075_s4 + $0x30] sm:$0xff] }
   0xe   :  { %295 = vperm.xlu1 %661, %v277_v47   ;;  %v281_v51 = vld [vmem:[%s1075_s4 + $0x20] sm:$0xff]  ;;  %v279_v58 = vld [vmem:[%s1075_s4 + $0x10] sm:$0xff]  ;;  %v280_v1 = vld [vmem:[%s1075_s4 + $0x18] sm:$0xff] }
   0xf   :  { %181 = vxpose.xlu0.b32.cont [2/16] %v772_v16, 128  ;;  %v285_v55 = vld [vmem:[%s1075_s4 + $0x40] sm:$0xff]  ;;  %v287_v59 = vld [vmem:[%s1075_s4 + $0x50] sm:$0xff]  ;;  %305 = vperm.xlu2 %662, %v279_v58  }
  0x10   :  { %v664_v60 = vld [vmem:[%s1073_s3] ss:$0 sm:$0xff] }
  0x11   :  { %597 = vmatmul.msk.f32.gmra.mxu0 %vm50_vm0, %v27_v5  ;;  %v289_v2 = vld [vmem:[%s1075_s4 + $0x60] sm:$0xff] }
  0x16   :  { %300 = vperm.xlu1 %661, %v278_v49  }
  0x17   :  { %182 = vxpose.xlu0.b32.cont [3/16] %v782_v18, 128  ;;  %310 = vperm.xlu2 %662, %v280_v1  }
  0x19   :  { %598 = vmatmul.msk.f32.gmra.mxu0 %vm50_vm0, %v28_v6 }
  0x1e   :  { %315 = vperm.xlu1 %661, %v281_v51  }
  0x1f   :  { %183 = vxpose.xlu0.b32.cont [4/16] %v791_v20, 128 }
  0x21   :  { %599 = vmatmul.msk.f32.gmra.mxu0 %vm50_vm0, %v29_v7  ;;  %v282_v7 = vld [vmem:[%s1075_s4 + $0x28] sm:$0xff] }
  0x22   :  { %320 = vperm.xlu2 %662, %v282_v7  }
  0x26   :  { %325 = vperm.xlu1 %661, %v283_v53   ;;  %v390_v53 = vld [vmem:[%s1076_s5 + $0x8] sm:$0xff] }
  0x27   :  { %184 = vxpose.xlu0.b32.cont [5/16] %v801_v22, 128 }
  0x29   :  { %600 = vmatmul.msk.f32.gmra.mxu0 %vm50_vm0, %v30_v8  ;;  %v291_v8 = vld [vmem:[%s1075_s4 + $0x70] sm:$0xff] }
  0x2e   :  { %335 = vperm.xlu1 %661, %v285_v55   ;;  %v389_v55 = vld [vmem:[%s1076_s5] sm:$0xff] }
  0x2f   :  { %185 = vxpose.xlu0.b32.cont [6/16] %v811_v24, 128 }
  0x31   :  { %601 = vmatmul.msk.f32.gmra.mxu0 %vm50_vm0, %v31_v9 }
  0x36   :  { %345 = vperm.xlu1 %661, %v287_v59  }
  0x37   :  { %186 = vxpose.xlu0.b32.cont [7/16] %v821_v26, 128 }
  0x39   :  { %602 = vmatmul.msk.f32.gmra.mxu0 %vm50_vm0, %v32_v10 }
  0x3e   :  { %355 = vperm.xlu1 %661, %v289_v2  }
  0x3f   :  { %187 = vxpose.xlu0.b32.cont [8/16] %v830_v28, 128 }
  0x41   :  { %603 = vmatmul.msk.f32.gmra.mxu0 %vm50_vm0, %v33_v11 }
  0x46   :  { %365 = vperm.xlu1 %661, %v291_v8  }
  0x47   :  { %188 = vxpose.xlu0.b32.cont [9/16] %v838_v30, 128 }
  0x49   :  { %604 = vmatmul.msk.f32.gmra.mxu0 %vm50_vm0, %v34_v12 }
  0x4f   :  { %189 = vxpose.xlu0.b32.cont [10/16] %v846_v32, 128 }
  0x51   :  { %605 = vmatmul.msk.f32.gmra.mxu0 %vm50_vm0, %v35_v13 }
  0x57   :  { %190 = vxpose.xlu0.b32.cont [11/16] %v854_v34, 128 }
  0x59   :  { %606 = vmatmul.msk.f32.gmra.mxu0 %vm50_vm0, %v36_v15  ;;  %v284_v15 = vld [vmem:[%s1075_s4 + $0x38] sm:$0xff] }
  0x5a   :  { %330 = vperm.xlu2 %662, %v284_v15  }
  0x5f   :  { %191 = vxpose.xlu0.b32.cont [12/16] %v862_v36, 128 }
  0x61   :  { %607 = vmatmul.msk.f32.gmra.mxu0 %vm50_vm0, %v37_v17 }
  0x67   :  { %192 = vxpose.xlu0.b32.cont [13/16] %v870_v38, 128 }
  0x69   :  { %608 = vmatmul.msk.f32.gmra.mxu0 %vm50_vm0, %v38_v19  ;;  %v306_v1 = vpop.permute.xlu2 %305 }
  0x6f   :  { %193 = vxpose.xlu0.b32.cont [14/16] %v878_v40, 128 }
  0x71   :  { %609 = vmatmul.msk.f32.gmra.mxu0 %vm50_vm0, %v39_v21 }
  0x77   :  { %194 = vxpose.xlu0.b32.cont [15/16] %v886_v42, 128 }
  0x79   :  { %610 = vmatmul.msk.f32.gmra.mxu0 %vm50_vm0, %v40_v23 }
  0x7f   :  { %195 = vxpose.xlu0.b32.end [16/16] %v892_v44, 128 }
  0x80   :  { %v296_v58 = vpop.permute.xlu1 %295 }
  0x81   :  { %611 = vmatmul.msk.f32.gmra.mxu0 %vm50_vm0, %v41_v25 }
  0x86   :  { %v825_v27 = vpop.f32.mrf.mxu0 }
  0x8e   :  { %v833_v29 = vpop.f32.mrf.mxu0 }
  0x96   :  { %v841_v31 = vpop.f32.mrf.mxu0 }
  0x97   :  { %v123_v25 = vadd.f32 %v664_v60, %v841_v31  ;;  %v288_v31 = vld [vmem:[%s1075_s4 + $0x58] sm:$0xff] }
  0x9e   :  { %v849_v33 = vpop.f32.mrf.mxu0 }
  0x9f   :  { %v126_v23 = vadd.f32 %v664_v60, %v849_v33 }
  0xa6   :  { %v857_v35 = vpop.f32.mrf.mxu0 }
  0xa7   :  { %v129_v19 = vadd.f32 %v664_v60, %v857_v35  ;;  %v117_v35 = vadd.f32 %v664_v60, %v825_v27  ;;  %v292_v27 = vld [vmem:[%s1075_s4 + $0x78] sm:$0xff] }
  0xab   :  { %v912_v57 = vpop.trf.xlu0 }
  0xae   :  { %v865_v37 = vpop.f32.mrf.mxu0 }
  0xaf   :  { %v132_v17 = vadd.f32 %v664_v60, %v865_v37  ;;  %v286_v37 = vld [vmem:[%s1075_s4 + $0x48] sm:$0xff] }
  0xb0   :  { %340 = vperm.xlu2 %662, %v286_v37  }
  0xb3   :  { %v197_v0 = vpop.trf.xlu0 }
  0xb6   :  { %v873_v39 = vpop.f32.mrf.mxu0 }
  0xb7   :  { %v135_v13 = vadd.f32 %v664_v60, %v873_v39  ;;  %v120_v39 = vadd.f32 %v664_v60, %v833_v29 }
  0xb8   :  { %350 = vperm.xlu2 %662, %v288_v31  }
  0xbb   :  { %v198_v10 = vpop.trf.xlu0 }
  0xbe   :  { %v881_v41 = vpop.f32.mrf.mxu0 }
  0xbf   :  { %v138_v12 = vadd.f32 %v664_v60, %v881_v41  ;;  %v290_v41 = vld [vmem:[%s1075_s4 + $0x68] sm:$0xff] }
  0xc0   :  { %360 = vperm.xlu2 %662, %v290_v41  }
  0xc3   :  { %v199_v21 = vpop.trf.xlu0 }
  0xc6   :  { %v140_v43 = vpop.f32.mrf.mxu0 }
  0xc7   :  { %v141_v11 = vadd.f32 %v664_v60, %v140_v43 }
  0xc8   :  { %370 = vperm.xlu2 %662, %v292_v27  }
  0xcb   :  { %v200_v33 = vpop.trf.xlu0 }
  0xce   :  { %v143_v45 = vpop.f32.mrf.mxu0 }
  0xcf   :  { %v144_v9 = vadd.f32 %v664_v60, %v143_v45 }
  0xd3   :  { %v201_v29 = vpop.trf.xlu0 }
  0xd6   :  { %v146_v48 = vpop.f32.mrf.mxu0 }
  0xd7   :  { %v147_v6 = vadd.f32 %v664_v60, %v146_v48 }
  0xdb   :  { %v202_v43 = vpop.trf.xlu0 }
  0xde   :  { %v149_v50 = vpop.f32.mrf.mxu0 }
  0xdf   :  { %v150_v5 = vadd.f32 %v664_v60, %v149_v50 }
  0xe3   :  { %v203_v45 = vpop.trf.xlu0 }
  0xe6   :  { %v152_v52 = vpop.f32.mrf.mxu0  ;;  %663 = vset.pattern.permute.xlu0 %v666_v46  ;;  %v392_v46 = vld [vmem:[%s1076_s5 + $0x18] sm:$0xff] }
  0xe7   :  { %v153_v4 = vadd.f32 %v664_v60, %v152_v52  ;;  %v391_v52 = vld [vmem:[%s1076_s5 + $0x10] sm:$0xff]  ;;  %453 = vmatpush.msra.mxu2 %v392_v46 }
  0xe9   :  { %454 = vmatpush.msra.mxu2 %v391_v52 }
  0xeb   :  { %v204_v47 = vpop.trf.xlu0  ;;  %455 = vmatpush.msra.mxu2 %v390_v53 }
  0xed   :  { %456 = vmatpush.msra.mxu2 %v389_v55 }
  0xee   :  { %v155_v54 = vpop.f32.mrf.mxu0 }
  0xef   :  { %v156_v3 = vadd.f32 %v664_v60, %v155_v54 }
  0xf3   :  { %v205_v48 = vpop.trf.xlu0 }
  0xf6   :  { %v158_v56 = vpop.f32.mrf.mxu0 }
  0xf7   :  { %v159_v63 = vadd.f32 %v664_v60, %v158_v56 }
  0xfb   :  { %v206_v49 = vpop.trf.xlu0 }
  0xfe   :  { %v161_v61 = vpop.f32.mrf.mxu0 }
  0xff   :  { %v162_v62 = vadd.f32 %v664_v60, %v161_v61 }
 0x101   :  { %212 = vmatpush.msrb.mxu0 %v162_v62  ;;  %628 = vmatpush.msra.mxu1 %v162_v62  ;;  %v301_v62 = vpop.permute.xlu1 %300 }
 0x103   :  { %213 = vmatpush.msrb.mxu0 %v159_v63  ;;  %629 = vmatpush.msra.mxu1 %v159_v63  ;;  %v207_v50 = vpop.trf.xlu0 }
 0x105   :  { %214 = vmatpush.msrb.mxu0 %v156_v3  ;;  %630 = vmatpush.msra.mxu1 %v156_v3 }
 0x107   :  { %215 = vmatpush.msrb.mxu0 %v153_v4  ;;  %631 = vmatpush.msra.mxu1 %v153_v4  ;;  %v311_v4 = vpop.permute.xlu2 %310 }
 0x109   :  { %216 = vmatpush.msrb.mxu0 %v150_v5  ;;  %632 = vmatpush.msra.mxu1 %v150_v5  ;;  %v316_v7 = vpop.permute.xlu1 %315 }
 0x10b   :  { %217 = vmatpush.msrb.mxu0 %v147_v6  ;;  %633 = vmatpush.msra.mxu1 %v147_v6  ;;  %v208_v51 = vpop.trf.xlu0 }
 0x10d   :  { %218 = vmatpush.msrb.mxu0 %v144_v9  ;;  %634 = vmatpush.msra.mxu1 %v144_v9 }
 0x10f   :  { %219 = vmatpush.msrb.mxu0 %v141_v11  ;;  %635 = vmatpush.msra.mxu1 %v141_v11 }
 0x111   :  { %220 = vmatpush.msrb.mxu0 %v138_v12  ;;  %636 = vmatpush.msra.mxu1 %v138_v12 }
 0x113   :  { %221 = vmatpush.msrb.mxu0 %v135_v13  ;;  %637 = vmatpush.msra.mxu1 %v135_v13  ;;  %v209_v54 = vpop.trf.xlu0  ;;  %v326_v13 = vpop.permute.xlu1 %325 }
 0x115   :  { %222 = vmatpush.msrb.mxu0 %v132_v17  ;;  %638 = vmatpush.msra.mxu1 %v132_v17 }
 0x117   :  { %223 = vmatpush.msrb.mxu0 %v129_v19  ;;  %639 = vmatpush.msra.mxu1 %v129_v19 }
 0x119   :  { %224 = vmatpush.msrb.mxu0 %v126_v23  ;;  %640 = vmatpush.msra.mxu1 %v126_v23 }
 0x11b   :  { %225 = vmatpush.msrb.mxu0 %v123_v25  ;;  %641 = vmatpush.msra.mxu1 %v123_v25  ;;  %v210_v56 = vpop.trf.xlu0  ;;  %v336_v25 = vpop.permute.xlu1 %335 }
 0x11d   :  { %226 = vmatpush.msrb.mxu0 %v120_v39  ;;  %642 = vmatpush.msra.mxu1 %v120_v39 }
 0x11f   :  { %227 = vmatpush.msrb.mxu0 %v117_v35  ;;  %643 = vmatpush.msra.mxu1 %v117_v35 }
 0x120   :  { %228 = vmatmul.f32.vlgmr.msrb.gmra.mxu0 %v912_v57  ;;  %231 = vmatmul.f32.vlgmr.msra.gmra.mxu1 %v197_v0 }
 0x123   :  { %v211_v57 = vpop.trf.xlu0 }
 0x128   :  { %234 = vmatmul.f32.gmra.mxu1 %v198_v10  ;;  %v321_v10 = vpop.permute.xlu2 %320 }
 0x130   :  { %237 = vmatmul.f32.gmra.mxu1 %v199_v21  ;;  %v331_v19 = vpop.permute.xlu2 %330 }
 0x138   :  { %240 = vmatmul.f32.gmra.mxu1 %v200_v33  ;;  %v341_v35 = vpop.permute.xlu2 %340 }
 0x140   :  { %243 = vmatmul.f32.gmra.mxu1 %v201_v29  ;;  %v346_v29 = vpop.permute.xlu1 %345 }
 0x148   :  { %246 = vmatmul.f32.gmra.mxu1 %v202_v43  ;;  %v351_v43 = vpop.permute.xlu2 %350 }
 0x150   :  { %249 = vmatmul.f32.gmra.mxu1 %v203_v45 }
 0x158   :  { %252 = vmatmul.f32.gmra.mxu1 %v204_v47 }
 0x160   :  { %255 = vmatmul.f32.gmra.mxu1 %v205_v48  ;;  %v356_v48 = vpop.permute.xlu1 %355 }
 0x168   :  { %258 = vmatmul.f32.gmra.mxu1 %v206_v49  ;;  %v366_v53 = vpop.permute.xlu1 %365 }
 0x170   :  { %261 = vmatmul.f32.gmra.mxu1 %v207_v50 }
 0x178   :  { %264 = vmatmul.f32.gmra.mxu1 %v208_v51  ;;  %v361_v51 = vpop.permute.xlu2 %360 }
 0x180   :  { %267 = vmatmul.f32.gmra.mxu1 %v209_v54 }
 0x188   :  { %270 = vmatmul.f32.gmra.mxu1 %v210_v56  ;;  %v371_v56 = vpop.permute.xlu2 %370 }
 0x190   :  { %273 = vmatmul.f32.gmra.mxu1 %v211_v57 }
 0x19d   :  { %v229_v59 = vpop.f32.mrf.mxu0  ;;  %v232_v60 = vpop.f32.mrf.mxu1 }
 0x19e   :  { %v373_v61 = vmul.f32 %v296_v58, %v229_v59  ;;  %v374_v0 = vmul.f32 %v301_v62, %v232_v60 }
 0x1a0   :  { %612 = vmatmul.msk.f32.vlgmr.msra.gmra.mxu2 %vm50_vm0, %v373_v61 }
 0x1a5   :  { %v235_v63 = vpop.f32.mrf.mxu1 }
 0x1a6   :  { %v375_v2 = vmul.f32 %v306_v1, %v235_v63 }
 0x1a8   :  { %613 = vmatmul.msk.f32.gmra.mxu2 %vm50_vm0, %v374_v0 }
 0x1ad   :  { %v238_v3 = vpop.f32.mrf.mxu1 }
 0x1ae   :  { %v376_v6 = vmul.f32 %v311_v4, %v238_v3 }
 0x1b0   :  { %614 = vmatmul.msk.f32.gmra.mxu2 %vm50_vm0, %v375_v2 }
 0x1b5   :  { %v241_v5 = vpop.f32.mrf.mxu1 }
 0x1b6   :  { %v377_v9 = vmul.f32 %v316_v7, %v241_v5 }
 0x1b8   :  { %615 = vmatmul.msk.f32.gmra.mxu2 %vm50_vm0, %v376_v6 }
 0x1bd   :  { %v244_v8 = vpop.f32.mrf.mxu1 }
 0x1be   :  { %v378_v12 = vmul.f32 %v321_v10, %v244_v8 }
 0x1c0   :  { %616 = vmatmul.msk.f32.gmra.mxu2 %vm50_vm0, %v377_v9 }
 0x1c5   :  { %v247_v11 = vpop.f32.mrf.mxu1 }
 0x1c6   :  { %v379_v17 = vmul.f32 %v326_v13, %v247_v11 }
 0x1c8   :  { %617 = vmatmul.msk.f32.gmra.mxu2 %vm50_vm0, %v378_v12 }
 0x1cd   :  { %v250_v15 = vpop.f32.mrf.mxu1 }
 0x1ce   :  { %v380_v23 = vmul.f32 %v331_v19, %v250_v15 }
 0x1d0   :  { %618 = vmatmul.msk.f32.gmra.mxu2 %vm50_vm0, %v379_v17 }
 0x1d5   :  { %v253_v21 = vpop.f32.mrf.mxu1 }
 0x1d6   :  { %v381_v39 = vmul.f32 %v336_v25, %v253_v21 }
 0x1d8   :  { %619 = vmatmul.msk.f32.gmra.mxu2 %vm50_vm0, %v380_v23 }
 0x1dd   :  { %v256_v37 = vpop.f32.mrf.mxu1 }
 0x1de   :  { %v382_v31 = vmul.f32 %v341_v35, %v256_v37 }
 0x1e0   :  { %620 = vmatmul.msk.f32.gmra.mxu2 %vm50_vm0, %v381_v39 }
 0x1e5   :  { %v259_v33 = vpop.f32.mrf.mxu1 }
 0x1e6   :  { %v383_v27 = vmul.f32 %v346_v29, %v259_v33 }
 0x1e8   :  { %621 = vmatmul.msk.f32.gmra.mxu2 %vm50_vm0, %v382_v31 }
 0x1ed   :  { %v262_v41 = vpop.f32.mrf.mxu1 }
 0x1ee   :  { %v384_v47 = vmul.f32 %v351_v43, %v262_v41 }
 0x1f0   :  { %622 = vmatmul.msk.f32.gmra.mxu2 %vm50_vm0, %v383_v27 }
 0x1f5   :  { %v265_v45 = vpop.f32.mrf.mxu1 }
 0x1f6   :  { %v385_v49 = vmul.f32 %v356_v48, %v265_v45 }
 0x1f8   :  { %623 = vmatmul.msk.f32.gmra.mxu2 %vm50_vm0, %v384_v47 }
 0x1fd   :  { %v268_v50 = vpop.f32.mrf.mxu1 }
 0x1fe   :  { %v386_v46 = vmul.f32 %v361_v51, %v268_v50 }
 0x200   :  { %624 = vmatmul.msk.f32.gmra.mxu2 %vm50_vm0, %v385_v49 }
 0x205   :  { %v271_v52 = vpop.f32.mrf.mxu1 }
 0x206   :  { %v387_v54 = vmul.f32 %v366_v53, %v271_v52 }
 0x208   :  { %625 = vmatmul.msk.f32.gmra.mxu2 %vm50_vm0, %v386_v46 }
 0x20d   :  { %v274_v55 = vpop.f32.mrf.mxu1 }
 0x20e   :  { %v388_v57 = vmul.f32 %v371_v56, %v274_v55 }
 0x210   :  { %626 = vmatmul.msk.f32.gmra.mxu2 %vm50_vm0, %v387_v54 }
 0x218   :  { %627 = vmatmul.msk.f32.gmra.mxu2 %vm50_vm0, %v388_v57 }
 0x223   :  { %v458_v58 = vpop.f32.mrf.mxu2 }
 0x22b   :  { %v461_v59 = vpop.f32.mrf.mxu2 }
 0x233   :  { %v464_v60 = vpop.f32.mrf.mxu2 }
 0x23b   :  { %v467_v61 = vpop.f32.mrf.mxu2 }
 0x243   :  { %v470_v62 = vpop.f32.mrf.mxu2 }
 0x24b   :  { %v473_v63 = vpop.f32.mrf.mxu2 }
 0x253   :  { %v476_v0 = vpop.f32.mrf.mxu2 }
 0x25b   :  { %v479_v1 = vpop.f32.mrf.mxu2 }
 0x263   :  { %v482_v2 = vpop.f32.mrf.mxu2 }
 0x26b   :  { %v485_v3 = vpop.f32.mrf.mxu2 }
 0x273   :  { %v488_v4 = vpop.f32.mrf.mxu2 }
 0x27b   :  { %v491_v5 = vpop.f32.mrf.mxu2 }
 0x283   :  { %v494_v6 = vpop.f32.mrf.mxu2 }
 0x28b   :  { %v497_v7 = vpop.f32.mrf.mxu2 }
 0x293   :  { %v500_v8 = vpop.f32.mrf.mxu2 }
 0x29b   :  { %v503_v9 = vpop.f32.mrf.mxu2 }
 0x29c   :  { %510 = vmatpush.msrb.mxu2 %v503_v9  ;;  %644 = vmatpush.msra.mxu3 %v503_v9 }
 0x29e   :  { %511 = vmatpush.msrb.mxu2 %v500_v8  ;;  %645 = vmatpush.msra.mxu3 %v500_v8 }
 0x2a0   :  { %512 = vmatpush.msrb.mxu2 %v497_v7  ;;  %646 = vmatpush.msra.mxu3 %v497_v7 }
 0x2a2   :  { %513 = vmatpush.msrb.mxu2 %v494_v6  ;;  %647 = vmatpush.msra.mxu3 %v494_v6 }
 0x2a4   :  { %514 = vmatpush.msrb.mxu2 %v491_v5  ;;  %648 = vmatpush.msra.mxu3 %v491_v5 }
 0x2a6   :  { %515 = vmatpush.msrb.mxu2 %v488_v4  ;;  %649 = vmatpush.msra.mxu3 %v488_v4 }
 0x2a8   :  { %516 = vmatpush.msrb.mxu2 %v485_v3  ;;  %650 = vmatpush.msra.mxu3 %v485_v3 }
 0x2aa   :  { %517 = vmatpush.msrb.mxu2 %v482_v2  ;;  %651 = vmatpush.msra.mxu3 %v482_v2 }
 0x2ac   :  { %518 = vmatpush.msrb.mxu2 %v479_v1  ;;  %652 = vmatpush.msra.mxu3 %v479_v1 }
 0x2ae   :  { %519 = vmatpush.msrb.mxu2 %v476_v0  ;;  %653 = vmatpush.msra.mxu3 %v476_v0 }
 0x2b0   :  { %520 = vmatpush.msrb.mxu2 %v473_v63  ;;  %654 = vmatpush.msra.mxu3 %v473_v63 }
 0x2b2   :  { %521 = vmatpush.msrb.mxu2 %v470_v62  ;;  %655 = vmatpush.msra.mxu3 %v470_v62 }
 0x2b4   :  { %522 = vmatpush.msrb.mxu2 %v467_v61  ;;  %656 = vmatpush.msra.mxu3 %v467_v61 }
 0x2b6   :  { %523 = vmatpush.msrb.mxu2 %v464_v60  ;;  %657 = vmatpush.msra.mxu3 %v464_v60 }
 0x2b8   :  { %524 = vmatpush.msrb.mxu2 %v461_v59  ;;  %658 = vmatpush.msra.mxu3 %v461_v59 }
 0x2ba   :  { %525 = vmatpush.msrb.mxu2 %v458_v58  ;;  %659 = vmatpush.msra.mxu3 %v458_v58 }
 0x2bb   :  { %529 = vmatmul.f32.vlgmr.msra.gmra.mxu3 %v772_v16  ;;  %526 = vmatmul.f32.vlgmr.msrb.gmra.mxu2 %v762_v14  ;;  %v665_v14 = vld [vmem:[%s1077_s6] ss:$0 sm:$0xff] }
 0x2c3   :  { %532 = vmatmul.f32.gmra.mxu3 %v782_v18 }
 0x2cb   :  { %535 = vmatmul.f32.gmra.mxu3 %v791_v20 }
 0x2d3   :  { %538 = vmatmul.f32.gmra.mxu3 %v801_v22 }
 0x2db   :  { %541 = vmatmul.f32.gmra.mxu3 %v811_v24 }
 0x2e3   :  { %544 = vmatmul.f32.gmra.mxu3 %v821_v26 }
 0x2eb   :  { %547 = vmatmul.f32.gmra.mxu3 %v830_v28 }
 0x2f3   :  { %550 = vmatmul.f32.gmra.mxu3 %v838_v30 }
 0x2fb   :  { %553 = vmatmul.f32.gmra.mxu3 %v846_v32 }
 0x303   :  { %556 = vmatmul.f32.gmra.mxu3 %v854_v34 }
 0x30b   :  { %559 = vmatmul.f32.gmra.mxu3 %v862_v36 }
 0x313   :  { %562 = vmatmul.f32.gmra.mxu3 %v870_v38 }
 0x31b   :  { %565 = vmatmul.f32.gmra.mxu3 %v878_v40 }
 0x323   :  { %568 = vmatmul.f32.gmra.mxu3 %v886_v42 }
 0x32b   :  { %571 = vmatmul.f32.gmra.mxu3 %v892_v44 }
 0x33e   :  { %v530_v16 = vpop.f32.mrf.mxu3  ;;  %v527_v17 = vpop.f32.mrf.mxu2 }
 0x33f   :  { %v531_v18 = vadd.f32 %v665_v14, %v530_v16  ;;  %v528_v19 = vadd.f32 %v665_v14, %v527_v17 }
 0x341   :  { %577 = vst.msk [vmem:[%s1078_s7 + $0x8] sm:$0xff] %vm575_vm1, %v531_v18 }
 0x342   :  { %576 = vst.msk [vmem:[%s1078_s7] sm:$0xff] %vm575_vm1, %v528_v19 }
 0x346   :  { %v533_v20 = vpop.f32.mrf.mxu3 }
 0x347   :  { %v534_v22 = vadd.f32 %v665_v14, %v533_v20 }
 0x349   :  { %578 = vst.msk [vmem:[%s1078_s7 + $0x10] sm:$0xff] %vm575_vm1, %v534_v22 }
 0x34e   :  { %v536_v24 = vpop.f32.mrf.mxu3 }
 0x34f   :  { %v537_v26 = vadd.f32 %v665_v14, %v536_v24 }
 0x351   :  { %579 = vst.msk [vmem:[%s1078_s7 + $0x18] sm:$0xff] %vm575_vm1, %v537_v26 }
 0x356   :  { %v539_v28 = vpop.f32.mrf.mxu3 }
 0x357   :  { %v540_v30 = vadd.f32 %v665_v14, %v539_v28 }
 0x359   :  { %580 = vst.msk [vmem:[%s1078_s7 + $0x20] sm:$0xff] %vm575_vm1, %v540_v30 }
 0x35e   :  { %v542_v32 = vpop.f32.mrf.mxu3 }
 0x35f   :  { %v543_v34 = vadd.f32 %v665_v14, %v542_v32 }
 0x361   :  { %581 = vst.msk [vmem:[%s1078_s7 + $0x28] sm:$0xff] %vm575_vm1, %v543_v34 }
 0x366   :  { %v545_v36 = vpop.f32.mrf.mxu3 }
 0x367   :  { %v546_v38 = vadd.f32 %v665_v14, %v545_v36 }
 0x369   :  { %582 = vst.msk [vmem:[%s1078_s7 + $0x30] sm:$0xff] %vm575_vm1, %v546_v38 }
 0x36e   :  { %v548_v40 = vpop.f32.mrf.mxu3 }
 0x36f   :  { %v549_v42 = vadd.f32 %v665_v14, %v548_v40 }
 0x371   :  { %583 = vst.msk [vmem:[%s1078_s7 + $0x38] sm:$0xff] %vm575_vm1, %v549_v42 }
 0x376   :  { %v551_v44 = vpop.f32.mrf.mxu3 }
 0x377   :  { %v552_v10 = vadd.f32 %v665_v14, %v551_v44 }
 0x379   :  { %584 = vst.msk [vmem:[%s1078_s7 + $0x40] sm:$0xff] %vm575_vm1, %v552_v10 }
 0x37e   :  { %v554_v11 = vpop.f32.mrf.mxu3 }
 0x37f   :  { %v555_v12 = vadd.f32 %v665_v14, %v554_v11 }
 0x381   :  { %585 = vst.msk [vmem:[%s1078_s7 + $0x48] sm:$0xff] %vm575_vm1, %v555_v12 }
 0x386   :  { %v557_v13 = vpop.f32.mrf.mxu3 }
 0x387   :  { %v558_v15 = vadd.f32 %v665_v14, %v557_v13 }
 0x389   :  { %586 = vst.msk [vmem:[%s1078_s7 + $0x50] sm:$0xff] %vm575_vm1, %v558_v15 }
 0x38e   :  { %v560_v21 = vpop.f32.mrf.mxu3 }
 0x38f   :  { %v561_v23 = vadd.f32 %v665_v14, %v560_v21 }
 0x391   :  { %587 = vst.msk [vmem:[%s1078_s7 + $0x58] sm:$0xff] %vm575_vm1, %v561_v23 }
 0x396   :  { %v563_v25 = vpop.f32.mrf.mxu3 }
 0x397   :  { %v564_v37 = vadd.f32 %v665_v14, %v563_v25 }
 0x399   :  { %588 = vst.msk [vmem:[%s1078_s7 + $0x60] sm:$0xff] %vm575_vm1, %v564_v37 }
 0x39e   :  { %v566_v39 = vpop.f32.mrf.mxu3 }
 0x39f   :  { %v567_v35 = vadd.f32 %v665_v14, %v566_v39 }
 0x3a1   :  { %589 = vst.msk [vmem:[%s1078_s7 + $0x68] sm:$0xff] %vm575_vm1, %v567_v35 }
 0x3a6   :  { %v569_v33 = vpop.f32.mrf.mxu3 }
 0x3a7   :  { %v570_v31 = vadd.f32 %v665_v14, %v569_v33 }
 0x3a9   :  { %590 = vst.msk [vmem:[%s1078_s7 + $0x70] sm:$0xff] %vm575_vm1, %v570_v31 }
 0x3ae   :  { %v572_v29 = vpop.f32.mrf.mxu3 }
 0x3af   :  { %v573_v41 = vadd.f32 %v665_v14, %v572_v29 }
 0x3b1   :  { %591 = vst.msk [vmem:[%s1078_s7 + $0x78] sm:$0xff] %vm575_vm1, %v573_v41 }

</bundles_post_ra>
